<compile_context>
chip_gen: v6e
topology: v6e:2x2x1
jax: 0.10.0
libtpu: 0.0.40
codegen_flags: <defaults>
</compile_context>

<pallas_src>
import jax
import jax.numpy as jnp
from jax.experimental import pallas as pl
from jax.experimental.pallas import tpu as pltpu

IN_DIM, H1, H2, OUT_DIM = 784, 200, 64, 10
H1_PAD, H2_PAD, OUT_PAD = 256, 128, 128  # lane-dense padded feature dims


def _round_up(n, m):
    return ((n + m - 1) // m) * m


def _pad_to(a, shape):
    pads = [(0, s - d) for d, s in zip(a.shape, shape)]
    return jnp.pad(a, pads)


def _mlp_kernel(x_ref, w1_ref, b1_ref, w2_ref, b2_ref, w3_ref, b3_ref, o_ref):
    # Fused: 3 matmuls (MXU, f32 accumulation) + bias + tanh (f32 on VPU/EUP), all tiles in VMEM.
    x = x_ref[...]
    h1 = jnp.tanh(
        jnp.dot(x, w1_ref[...], preferred_element_type=jnp.float32) + b1_ref[...]
    )
    h1 = h1.astype(w2_ref.dtype)
    h2 = jnp.tanh(
        jnp.dot(h1, w2_ref[...], preferred_element_type=jnp.float32) + b2_ref[...]
    )
    h2 = h2.astype(w3_ref.dtype)
    o_ref[...] = (
        jnp.dot(h2, w3_ref[...], preferred_element_type=jnp.float32) + b3_ref[...]
    ).astype(o_ref.dtype)


def multi_class_model_forward(x, params, *, batch_tile=256, compute_dtype=jnp.bfloat16):
    """x: [B, 784] float32. params: dict of w1,b1,w2,b2,w3,b3 (weights stored [in, out]).

    compute_dtype: dtype of the matmul operands (bf16 recommended on v5e/v6e/v7x; accumulation
    is always f32). Use jnp.float32 for bit-exact f32 results.
    """
    B = x.shape[0]
    # Batch tile: multiple of 8, no larger than the (rounded-up) batch.
    bt = min(_round_up(batch_tile, 8), _round_up(max(B, 1), 8))
    Bp = _round_up(B, bt)

    # Zero-pad batch and feature dims; cast matmul operands, keep biases f32.
    xp = _pad_to(x, (Bp, IN_DIM)).astype(compute_dtype)
    w1 = _pad_to(params["w1"], (IN_DIM, H1_PAD)).astype(compute_dtype)
    b1 = _pad_to(params["b1"], (1, H1_PAD)).astype(jnp.float32)
    w2 = _pad_to(params["w2"], (H1_PAD, H2_PAD)).astype(compute_dtype)
    b2 = _pad_to(params["b2"], (1, H2_PAD)).astype(jnp.float32)
    w3 = _pad_to(params["w3"], (H2_PAD, OUT_PAD)).astype(compute_dtype)
    b3 = _pad_to(params["b3"], (1, OUT_PAD)).astype(jnp.float32)

    grid = (Bp // bt,)

    flops = 2 * Bp * (IN_DIM * H1_PAD + H1_PAD * H2_PAD + H2_PAD * OUT_PAD)
    transcendentals = Bp * (H1_PAD + H2_PAD)
    bytes_accessed = (
        xp.size * xp.dtype.itemsize
        + sum(a.size * a.dtype.itemsize for a in (w1, b1, w2, b2, w3, b3))
        + Bp * OUT_PAD * 4
    )

    # Weights/biases are small and constant across the grid: map the full array to every step.
    full = lambda shape: pl.BlockSpec(shape, lambda i: (0, 0))

    out = pl.pallas_call(
        _mlp_kernel,
        out_shape=jax.ShapeDtypeStruct((Bp, OUT_PAD), jnp.float32),
        grid_spec=pltpu.PrefetchScalarGridSpec(
            num_scalar_prefetch=0,
            grid=grid,
            in_specs=[
                pl.BlockSpec((bt, IN_DIM), lambda i: (i, 0)),  # x tile
                full((IN_DIM, H1_PAD)),
                full((1, H1_PAD)),
                full((H1_PAD, H2_PAD)),
                full((1, H2_PAD)),
                full((H2_PAD, OUT_PAD)),
                full((1, OUT_PAD)),
            ],
            out_specs=pl.BlockSpec((bt, OUT_PAD), lambda i: (i, 0)),
        ),
        compiler_params=pltpu.CompilerParams(
            dimension_semantics=("parallel",),
        ),
        cost_estimate=pl.CostEstimate(
            flops=flops,
            transcendentals=transcendentals,
            bytes_accessed=bytes_accessed,
        ),
    )(xp, w1, b1, w2, b2, w3, b3)

    # Slice away batch padding and padded output lanes.
    return out[:B, :OUT_DIM]


def init_params(key):
    """Deterministic parameter init (shapes from MultiClassModel.__init__, torch Linear init)."""
    k1, k2, k3 = jax.random.split(key, 3)

    def linear(k, fan_in, fan_out):
        bound = 1.0 / jnp.sqrt(fan_in)
        kw, kb = jax.random.split(k)
        w = jax.random.uniform(kw, (fan_in, fan_out), jnp.float32, -bound, bound)
        b = jax.random.uniform(kb, (1, fan_out), jnp.float32, -bound, bound)
        return w, b

    w1, b1 = linear(k1, IN_DIM, H1)
    w2, b2 = linear(k2, H1, H2)
    w3, b3 = linear(k3, H2, OUT_DIM)
    return {"w1": w1, "b1": b1, "w2": w2, "b2": b2, "w3": w3, "b3": b3}


if __name__ == "__main__":
    key = jax.random.PRNGKey(0)
    kx, kp = jax.random.split(key)

    B = 32
    x = jax.random.normal(kx, (B, IN_DIM), jnp.float32)
    params = init_params(kp)

    # Pure-JAX reference.
    ref = jnp.tanh(x @ params["w1"] + params["b1"])
    ref = jnp.tanh(ref @ params["w2"] + params["b2"])
    ref = ref @ params["w3"] + params["b3"]

    # Default (bf16 matmul operands, f32 accumulation) — the perf path.
    out_bf16 = multi_class_model_forward(x, params)
    out_bf16 = jax.block_until_ready(out_bf16)
    assert out_bf16.shape == (B, OUT_DIM)
    assert jnp.allclose(out_bf16, ref, atol=5e-2, rtol=5e-2)

    # Exact f32 path for a strict correctness check.
    out_f32 = multi_class_model_forward(x, params, compute_dtype=jnp.float32)
    out_f32 = jax.block_until_ready(out_f32)
    assert out_f32.shape == (B, OUT_DIM)
    assert jnp.allclose(out_f32, ref, atol=1e-5, rtol=1e-5)

    print("KERNEL_OK")
</pallas_src>

<mosaic_0001>
module attributes {stable_mosaic.version = 11 : i64} {
  func.func @_mlp_kernel(%arg0: i32, %arg1: memref<32x784xbf16, #tpu.memory_space<vmem>>, %arg2: memref<784x256xbf16, #tpu.memory_space<vmem>>, %arg3: memref<1x256xf32, #tpu.memory_space<vmem>>, %arg4: memref<256x128xbf16, #tpu.memory_space<vmem>>, %arg5: memref<1x128xf32, #tpu.memory_space<vmem>>, %arg6: memref<128x128xbf16, #tpu.memory_space<vmem>>, %arg7: memref<1x128xf32, #tpu.memory_space<vmem>>, %arg8: memref<32x128xf32, #tpu.memory_space<vmem>>) attributes {dimension_semantics = [#tpu.dimension_semantics<parallel>], iteration_bounds = array<i64: 1>, scalar_prefetch = 0 : i64, scratch_operands = 0 : i64, tpu.core_type = #tpu.core_type<tc>, window_params = [{transform_indices = @transform_0, window_bounds = array<i64: 32, 784>}, {pipeline_mode = #tpu.pipeline_mode<synchronous>, transform_indices = @transform_1, window_bounds = array<i64: 784, 256>}, {pipeline_mode = #tpu.pipeline_mode<synchronous>, transform_indices = @transform_2, window_bounds = array<i64: 1, 256>}, {pipeline_mode = #tpu.pipeline_mode<synchronous>, transform_indices = @transform_3, window_bounds = array<i64: 256, 128>}, {pipeline_mode = #tpu.pipeline_mode<synchronous>, transform_indices = @transform_4, window_bounds = array<i64: 1, 128>}, {pipeline_mode = #tpu.pipeline_mode<synchronous>, transform_indices = @transform_5, window_bounds = array<i64: 128, 128>}, {pipeline_mode = #tpu.pipeline_mode<synchronous>, transform_indices = @transform_6, window_bounds = array<i64: 1, 128>}, {transform_indices = @transform_7, window_bounds = array<i64: 32, 128>}]} {
    %c0 = arith.constant 0 : index
    %c0_0 = arith.constant 0 : index
    %0 = vector.load %arg1[%c0, %c0_0] : memref<32x784xbf16, #tpu.memory_space<vmem>>, vector<32x784xbf16>
    %c0_1 = arith.constant 0 : index
    %c0_2 = arith.constant 0 : index
    %1 = vector.load %arg2[%c0_1, %c0_2] : memref<784x256xbf16, #tpu.memory_space<vmem>>, vector<784x256xbf16>
    %cst = arith.constant dense<0.000000e+00> : vector<32x256xf32>
    %2 = tpu.matmul %0, %1, %cst {dimension_numbers = #tpu.dot_dimension_numbers<[1], [0], [0], [1], [0, 0, 1, 1], [], []>} : vector<32x784xbf16>, vector<784x256xbf16>, vector<32x256xf32> -> vector<32x256xf32>
    %c0_3 = arith.constant 0 : index
    %c0_4 = arith.constant 0 : index
    %3 = vector.load %arg3[%c0_3, %c0_4] : memref<1x256xf32, #tpu.memory_space<vmem>>, vector<1x256xf32>
    %4 = vector.broadcast %3 : vector<1x256xf32> to vector<32x256xf32>
    %5 = arith.addf %2, %4 : vector<32x256xf32>
    %6 = math.tanh %5 : vector<32x256xf32>
    %7 = arith.truncf %6 : vector<32x256xf32> to vector<32x256xbf16>
    %c0_5 = arith.constant 0 : index
    %c0_6 = arith.constant 0 : index
    %8 = vector.load %arg4[%c0_5, %c0_6] : memref<256x128xbf16, #tpu.memory_space<vmem>>, vector<256x128xbf16>
    %cst_7 = arith.constant dense<0.000000e+00> : vector<32x128xf32>
    %9 = tpu.matmul %7, %8, %cst_7 {dimension_numbers = #tpu.dot_dimension_numbers<[1], [0], [0], [1], [0, 0, 1, 1], [], []>} : vector<32x256xbf16>, vector<256x128xbf16>, vector<32x128xf32> -> vector<32x128xf32>
    %c0_8 = arith.constant 0 : index
    %c0_9 = arith.constant 0 : index
    %10 = vector.load %arg5[%c0_8, %c0_9] : memref<1x128xf32, #tpu.memory_space<vmem>>, vector<1x128xf32>
    %11 = vector.broadcast %10 : vector<1x128xf32> to vector<32x128xf32>
    %12 = arith.addf %9, %11 : vector<32x128xf32>
    %13 = math.tanh %12 : vector<32x128xf32>
    %14 = arith.truncf %13 : vector<32x128xf32> to vector<32x128xbf16>
    %c0_10 = arith.constant 0 : index
    %c0_11 = arith.constant 0 : index
    %15 = vector.load %arg6[%c0_10, %c0_11] : memref<128x128xbf16, #tpu.memory_space<vmem>>, vector<128x128xbf16>
    %cst_12 = arith.constant dense<0.000000e+00> : vector<32x128xf32>
    %16 = tpu.matmul %14, %15, %cst_12 {dimension_numbers = #tpu.dot_dimension_numbers<[1], [0], [0], [1], [0, 0, 1, 1], [], []>} : vector<32x128xbf16>, vector<128x128xbf16>, vector<32x128xf32> -> vector<32x128xf32>
    %c0_13 = arith.constant 0 : index
    %c0_14 = arith.constant 0 : index
    %17 = vector.load %arg7[%c0_13, %c0_14] : memref<1x128xf32, #tpu.memory_space<vmem>>, vector<1x128xf32>
    %18 = vector.broadcast %17 : vector<1x128xf32> to vector<32x128xf32>
    %19 = arith.addf %16, %18 : vector<32x128xf32>
    %c0_15 = arith.constant 0 : index
    %c0_16 = arith.constant 0 : index
    %20 = vector.load %arg8[%c0_15, %c0_16] : memref<32x128xf32, #tpu.memory_space<vmem>>, vector<32x128xf32>
    tpu.vector_store %arg8[%c0_15, %c0_16], %19 {strides = array<i32>} : memref<32x128xf32, #tpu.memory_space<vmem>>, vector<32x128xf32>,
    return
  }
  func.func @transform_0(%arg0: i32) -> (i32, i32) {
    %c0_i32 = arith.constant 0 : i32
    %c0_i32_0 = arith.constant 0 : i32
    return %arg0, %c0_i32 : i32, i32
  }
  func.func @transform_1(%arg0: i32) -> (i32, i32) {
    %c0_i32 = arith.constant 0 : i32
    %c0_i32_0 = arith.constant 0 : i32
    %c0_i32_1 = arith.constant 0 : i32
    return %c0_i32, %c0_i32_0 : i32, i32
  }
  func.func @transform_2(%arg0: i32) -> (i32, i32) {
    %c0_i32 = arith.constant 0 : i32
    %c0_i32_0 = arith.constant 0 : i32
    %c0_i32_1 = arith.constant 0 : i32
    return %c0_i32, %c0_i32_0 : i32, i32
  }
  func.func @transform_3(%arg0: i32) -> (i32, i32) {
    %c0_i32 = arith.constant 0 : i32
    %c0_i32_0 = arith.constant 0 : i32
    %c0_i32_1 = arith.constant 0 : i32
    return %c0_i32, %c0_i32_0 : i32, i32
  }
  func.func @transform_4(%arg0: i32) -> (i32, i32) {
    %c0_i32 = arith.constant 0 : i32
    %c0_i32_0 = arith.constant 0 : i32
    %c0_i32_1 = arith.constant 0 : i32
    return %c0_i32, %c0_i32_0 : i32, i32
  }
  func.func @transform_5(%arg0: i32) -> (i32, i32) {
    %c0_i32 = arith.constant 0 : i32
    %c0_i32_0 = arith.constant 0 : i32
    %c0_i32_1 = arith.constant 0 : i32
    return %c0_i32, %c0_i32_0 : i32, i32
  }
  func.func @transform_6(%arg0: i32) -> (i32, i32) {
    %c0_i32 = arith.constant 0 : i32
    %c0_i32_0 = arith.constant 0 : i32
    %c0_i32_1 = arith.constant 0 : i32
    return %c0_i32, %c0_i32_0 : i32, i32
  }
  func.func @transform_7(%arg0: i32) -> (i32, i32) {
    %c0_i32 = arith.constant 0 : i32
    %c0_i32_0 = arith.constant 0 : i32
    return %arg0, %c0_i32 : i32, i32
  }
}

</mosaic_0001>

<bundles_post_ra>
// kernel: tpu_custom_call.1
= control target key start
LH: loop header
LB: loop body
LE: loop exit
PB: predicated region body
PF: predicated region fallthrough
CT: control target
= control target key end

     0   :  { %12 = vsyncpa [#allocation3], 0  ;;  %s1950_s0 = inlined_call_operand.hbm [shape: bf16[32,784], index: 0, kind: input, shape index: {}]   ;;  %s1951_s1 = inlined_call_operand.hbm [shape: bf16[784,256], index: 1, kind: input, shape index: {}]   ;;  %s1952_s2 = inlined_call_operand.vmem [shape: f32[1,256], index: 2, kind: input, shape index: {}]   ;;  %s1953_s3 = inlined_call_operand.hbm [shape: bf16[256,128], index: 3, kind: input, shape index: {}]   ;;  %s1954_s4 = inlined_call_operand.vmem [shape: f32[1,128], index: 4, kind: input, shape index: {}]   ;;  %s1955_s5 = inlined_call_operand.hbm [shape: bf16[128,128], index: 5, kind: input, shape index: {}]   ;;  %s1956_s6 = inlined_call_operand.vmem [shape: f32[1,128], index: 6, kind: input, shape index: {}]   ;;  %s1957_s7 = inlined_call_operand.hbm [shape: f32[32,128], index: 7, kind: output, shape index: {}]  }
   0x1   :  { %13 = vsyncpa [#allocation6], 0 }
   0x2   :  { %14 = vsyncpa [#allocation9], 0 }
   0x3   :  { %15 = vsyncpa [#allocation4], 0  ;;  %s1866_s24 = smov [#allocation5]  }
   0x4   :  { %s33_s25 = sshll.u32 %s1866_s24, 4  ;;  %s34_s25 = int_to_ptr.vmem [resolvable:$true] %s33_s25 }
   0x5   :  { %s1766_s26 = scalar_lea.vmem %s34_s25, 12544  ;;  %p1771_p1 = scmp.lt.s32.totalorder %s34_s25, %s34_s25 }
   0x6   :  { %p1767_p0 = scmp.ne.s32.totalorder %s34_s25, %s1766_s26  ;;  %p1772_p2 = scmp.lt.s32.totalorder %s1766_s26, %s1766_s26 }
   0x8   :  { %p1773_p3 = por %p1772_p2, %p1771_p1 }
   0xa   :  { %p1774_p4 = pnand %p1773_p3, %p1767_p0 }
   0xc   :  { %1777 = shalt.err (!%p1774_p4)
}
   0xd   :  { %s1867_s27 = smov 128   ;;  %s1868_s28 = smov 8  }
   0xe   :  { %39 = dma.hbm_to_vmem [thread:$0]  %s1951_s1, 12544, %s34_s25, [#allocation6], %s1867_s27, %s1867_s27, %s1868_s28  }
   0xf   :  { %s1869_s8 = smov [#allocation2]  }
  0x10   :  { %s21_s9 = sshll.u32 %s1869_s8, 4  ;;  %s22_s9 = int_to_ptr.vmem [resolvable:$true] %s21_s9 }
  0x11   :  { %s1786_s10 = scalar_lea.vmem %s22_s9, 1792  ;;  %p1791_p6 = scmp.lt.s32.totalorder %s22_s9, %s22_s9 }
  0x12   :  { %p1787_p5 = scmp.ne.s32.totalorder %s22_s9, %s1786_s10  ;;  %p1792_p7 = scmp.lt.s32.totalorder %s1786_s10, %s1786_s10 }
  0x14   :  { %p1793_p8 = por %p1792_p7, %p1791_p6 }
  0x16   :  { %p1794_p9 = pnand %p1793_p8, %p1787_p5 }
  0x18   :  { %1797 = shalt.err (!%p1794_p9)
}
  0x19   :  { %s1870_s11 = smov 448   ;;  %s1871_s12 = smov 28  }
  0x1a   :  { %27 = dma.hbm_to_vmem [thread:$0]  %s1950_s0, 1792, %s22_s9, [#allocation3], %s1870_s11, %s1870_s11, %s1871_s12  }
  0x1b   :  { %s1872_s15 = smov [#allocation7]  }
  0x1c   :  { %s47_s16 = sshll.u32 %s1872_s15, 4  ;;  %s48_s16 = int_to_ptr.vmem [resolvable:$true] %s47_s16 }
  0x1d   :  { %s1806_s1 = scalar_lea.vmem %s48_s16, 2048  ;;  %p1811_p11 = scmp.lt.s32.totalorder %s48_s16, %s48_s16 }
  0x1e   :  { %p1807_p10 = scmp.ne.s32.totalorder %s48_s16, %s1806_s1  ;;  %p1812_p12 = scmp.lt.s32.totalorder %s1806_s1, %s1806_s1 }
  0x20   :  { %p1813_p13 = por %p1812_p12, %p1811_p11 }
  0x22   :  { %p1814_p0 = pnand %p1813_p13, %p1807_p10 }
  0x24   :  { %1817 = shalt.err (!%p1814_p0)
}
  0x25   :  { %s1873_s17 = smov 64   ;;  %s1874_s18 = smov 4  }
  0x26   :  { %53 = dma.hbm_to_vmem [thread:$0]  %s1953_s3, 2048, %s48_s16, [#allocation6], %s1873_s17, %s1873_s17, %s1874_s18  }
  0x27   :  { %s1875_s21 = smov [#allocation8]  }
  0x28   :  { %s61_s22 = sshll.u32 %s1875_s21, 4  ;;  %s62_s22 = int_to_ptr.vmem [resolvable:$true] %s61_s22 }
  0x29   :  { %s1826_s0 = scalar_lea.vmem %s62_s22, 1024  ;;  %p1831_p2 = scmp.lt.s32.totalorder %s62_s22, %s62_s22 }
  0x2a   :  { %p1827_p1 = scmp.ne.s32.totalorder %s62_s22, %s1826_s0  ;;  %p1832_p3 = scmp.lt.s32.totalorder %s1826_s0, %s1826_s0 }
  0x2c   :  { %p1833_p4 = por %p1832_p3, %p1831_p2 }
  0x2e   :  { %p1834_p5 = pnand %p1833_p4, %p1827_p1 }
  0x30   :  { %1837 = shalt.err (!%p1834_p5)
}
  0x31   :  { %67 = dma.hbm_to_vmem [thread:$0]  %s1955_s5, 1024, %s62_s22, [#allocation9], %s1873_s17, %s1873_s17, %s1874_s18  }
  0x32   :  { %1858 = dma.done.wait [#allocation3], 1792  }
  0x33   :  { %1859 = vsyncadd [#allocation3], 4294965504 }
  0x34   :  { %1860 = dma.done.wait [#allocation6], 14592  }
  0x35   :  { %1861 = vsyncadd [#allocation6], 4294952704 }
  0x36   :  { %1862 = dma.done.wait [#allocation9], 1024  }
  0x37   :  { %1863 = vsyncadd [#allocation9], 4294966272  ;;  %v1543_v0 = vld [vmem:[#allocation5 + $0x74] ss:$8 sps:$4 sm:$0xff]   ;;  %v1545_v1 = vld [vmem:[#allocation5 + $0x70] ss:$8 sps:$4 sm:$0xff]  }
  0x38   :  { %776 = vmatprep.subr.bf16.mxu0 %v1543_v0  ;;  %v1546_v2 = vld [vmem:[#allocation5 + $0x174] ss:$8 sps:$4 sm:$0xff]   ;;  %v1548_v3 = vld [vmem:[#allocation5 + $0x170] ss:$8 sps:$4 sm:$0xff]   ;;  %v1549_v4 = vld [vmem:[#allocation5 + $0x64] ss:$8 sps:$4 sm:$0xff]  }
  0x39   :  { %777 = vmatpush1.bf16.msra.mxu0 %v1545_v1  ;;  %v1551_v5 = vld [vmem:[#allocation5 + $0x60] ss:$8 sps:$4 sm:$0xff]   ;;  %829 = vmatprep.subr.bf16.mxu1 %v1546_v2  ;;  %v1552_v6 = vld [vmem:[#allocation5 + $0x164] ss:$8 sps:$4 sm:$0xff]   ;;  %v1555_v8 = vld [vmem:[#allocation5 + $0x54] ss:$8 sps:$4 sm:$0xff]  }
  0x3a   :  { %830 = vmatpush1.bf16.msra.mxu1 %v1548_v3  ;;  %778 = vmatprep.subr.bf16.mxu0 %v1549_v4  ;;  %v1554_v7 = vld [vmem:[#allocation5 + $0x160] ss:$8 sps:$4 sm:$0xff]   ;;  %v1557_v9 = vld [vmem:[#allocation5 + $0x50] ss:$8 sps:$4 sm:$0xff]   ;;  %v1558_v10 = vld [vmem:[#allocation5 + $0x154] ss:$8 sps:$4 sm:$0xff]  }
  0x3b   :  { %831 = vmatprep.subr.bf16.mxu1 %v1552_v6  ;;  %v1561_v11 = vld [vmem:[#allocation5 + $0x44] ss:$8 sps:$4 sm:$0xff]   ;;  %v1560_v12 = vld [vmem:[#allocation5 + $0x150] ss:$8 sps:$4 sm:$0xff]   ;;  %v1563_v14 = vld [vmem:[#allocation5 + $0x40] ss:$8 sps:$4 sm:$0xff]  }
  0x3c   :  { %v1564_v13 = vld [vmem:[#allocation5 + $0x144] ss:$8 sps:$4 sm:$0xff]   ;;  %v1567_v15 = vld [vmem:[#allocation5 + $0x34] ss:$8 sps:$4 sm:$0xff]   ;;  %v1566_v16 = vld [vmem:[#allocation5 + $0x140] ss:$8 sps:$4 sm:$0xff]  }
  0x3d   :  { %779 = vmatpush1.bf16.msra.mxu0 %v1551_v5  ;;  %v1570_v17 = vld [vmem:[#allocation5 + $0x134] ss:$8 sps:$4 sm:$0xff]   ;;  %v1569_v18 = vld [vmem:[#allocation5 + $0x30] ss:$8 sps:$4 sm:$0xff]   ;;  %v1573_v19 = vld [vmem:[#allocation5 + $0x24] ss:$8 sps:$4 sm:$0xff]  }
  0x3e   :  { %780 = vmatprep.subr.bf16.mxu0 %v1555_v8  ;;  %832 = vmatpush1.bf16.msra.mxu1 %v1554_v7  ;;  %v1572_v20 = vld [vmem:[#allocation5 + $0x130] ss:$8 sps:$4 sm:$0xff]   ;;  %v1576_v21 = vld [vmem:[#allocation5 + $0x124] ss:$8 sps:$4 sm:$0xff]   ;;  %v1575_v22 = vld [vmem:[#allocation5 + $0x20] ss:$8 sps:$4 sm:$0xff]  }
  0x3f   :  { %833 = vmatprep.subr.bf16.mxu1 %v1558_v10  ;;  %v1579_v23 = vld [vmem:[#allocation5 + $0x14] ss:$8 sps:$4 sm:$0xff]   ;;  %v1578_v24 = vld [vmem:[#allocation5 + $0x120] ss:$8 sps:$4 sm:$0xff]   ;;  %v1581_v26 = vld [vmem:[#allocation5 + $0x10] ss:$8 sps:$4 sm:$0xff]  }
  0x40   :  { %v1582_v25 = vld [vmem:[#allocation5 + $0x114] ss:$8 sps:$4 sm:$0xff]   ;;  %v1585_v27 = vld [vmem:[#allocation5 + $0x4] ss:$8 sps:$4 sm:$0xff]   ;;  %v1584_v28 = vld [vmem:[#allocation5 + $0x110] ss:$8 sps:$4 sm:$0xff]  }
  0x41   :  { %781 = vmatpush1.bf16.msra.mxu0 %v1557_v9  ;;  %v1588_v29 = vld [vmem:[#allocation5 + $0x104] ss:$8 sps:$4 sm:$0xff]   ;;  %v1587_v30 = vld [vmem:[#allocation5] ss:$8 sps:$4 sm:$0xff]   ;;  %v1591_v31 = vld [vmem:[#allocation5 + $0xf4] ss:$8 sps:$4 sm:$0xff]  }
  0x42   :  { %782 = vmatprep.subr.bf16.mxu0 %v1561_v11  ;;  %834 = vmatpush1.bf16.msra.mxu1 %v1560_v12  ;;  %v1590_v32 = vld [vmem:[#allocation5 + $0x100] ss:$8 sps:$4 sm:$0xff]   ;;  %v1594_v33 = vld [vmem:[#allocation5 + $0x1f4] ss:$8 sps:$4 sm:$0xff]   ;;  %v1593_v34 = vld [vmem:[#allocation5 + $0xf0] ss:$8 sps:$4 sm:$0xff]  }
  0x43   :  { %835 = vmatprep.subr.bf16.mxu1 %v1564_v13  ;;  %v1597_v35 = vld [vmem:[#allocation5 + $0xe4] ss:$8 sps:$4 sm:$0xff]   ;;  %v1596_v36 = vld [vmem:[#allocation5 + $0x1f0] ss:$8 sps:$4 sm:$0xff]   ;;  %v1599_v38 = vld [vmem:[#allocation5 + $0xe0] ss:$8 sps:$4 sm:$0xff]  }
  0x44   :  { %v1600_v37 = vld [vmem:[#allocation5 + $0x1e4] ss:$8 sps:$4 sm:$0xff]   ;;  %v1603_v39 = vld [vmem:[#allocation5 + $0xd4] ss:$8 sps:$4 sm:$0xff]   ;;  %v1602_v40 = vld [vmem:[#allocation5 + $0x1e0] ss:$8 sps:$4 sm:$0xff]  }
  0x45   :  { %783 = vmatpush1.bf16.msra.mxu0 %v1563_v14  ;;  %v1606_v41 = vld [vmem:[#allocation5 + $0x1d4] ss:$8 sps:$4 sm:$0xff]   ;;  %v1605_v42 = vld [vmem:[#allocation5 + $0xd0] ss:$8 sps:$4 sm:$0xff]   ;;  %v1609_v43 = vld [vmem:[#allocation5 + $0xc4] ss:$8 sps:$4 sm:$0xff]  }
  0x46   :  { %784 = vmatprep.subr.bf16.mxu0 %v1567_v15  ;;  %836 = vmatpush1.bf16.msra.mxu1 %v1566_v16  ;;  %v1608_v44 = vld [vmem:[#allocation5 + $0x1d0] ss:$8 sps:$4 sm:$0xff]   ;;  %v1612_v45 = vld [vmem:[#allocation5 + $0x1c4] ss:$8 sps:$4 sm:$0xff]   ;;  %v1611_v46 = vld [vmem:[#allocation5 + $0xc0] ss:$8 sps:$4 sm:$0xff]  }
  0x47   :  { %837 = vmatprep.subr.bf16.mxu1 %v1570_v17  ;;  %v1640_v47 = vld [vmem:[#allocation2 + $0x4] ss:$28 sps:$4 sm:$0xff]   ;;  %v1614_v49 = vld [vmem:[#allocation5 + $0x1c0] ss:$8 sps:$4 sm:$0xff]   ;;  %v1647_v51 = vld [vmem:[#allocation2 + $0xc] ss:$28 sps:$4 sm:$0xff]  }
  0x48   :  { %v1615_v48 = vld [vmem:[#allocation5 + $0xb4] ss:$8 sps:$4 sm:$0xff]   ;;  %808 = vmatprep.mubr.bf16.mxu0 %v1640_v47  ;;  %v1617_v52 = vld [vmem:[#allocation5 + $0xb0] ss:$8 sps:$4 sm:$0xff]   ;;  %v1621_v53 = vld [vmem:[#allocation5 + $0xa4] ss:$8 sps:$4 sm:$0xff]   ;;  %861 = vmatprep.mubr.bf16.mxu1 %v1647_v51 }
  0x49   :  { %785 = vmatpush1.bf16.msra.mxu0 %v1569_v18  ;;  %v1618_v50 = vld [vmem:[#allocation5 + $0x1b4] ss:$8 sps:$4 sm:$0xff]   ;;  %v1620_v54 = vld [vmem:[#allocation5 + $0x1b0] ss:$8 sps:$4 sm:$0xff]   ;;  %v1624_v55 = vld [vmem:[#allocation5 + $0x1a4] ss:$8 sps:$4 sm:$0xff]  }
  0x4a   :  { %786 = vmatprep.subr.bf16.mxu0 %v1573_v19  ;;  %838 = vmatpush1.bf16.msra.mxu1 %v1572_v20  ;;  %v1623_v56 = vld [vmem:[#allocation5 + $0xa0] ss:$8 sps:$4 sm:$0xff]   ;;  %v1627_v57 = vld [vmem:[#allocation5 + $0x94] ss:$8 sps:$4 sm:$0xff]   ;;  %v1629_v60 = vld [vmem:[#allocation5 + $0x90] ss:$8 sps:$4 sm:$0xff]  }
  0x4b   :  { %839 = vmatprep.subr.bf16.mxu1 %v1576_v21  ;;  %v1626_v58 = vld [vmem:[#allocation5 + $0x1a0] ss:$8 sps:$4 sm:$0xff]   ;;  %v1630_v59 = vld [vmem:[#allocation5 + $0x194] ss:$8 sps:$4 sm:$0xff]   ;;  %v1633_v61 = vld [vmem:[#allocation5 + $0x84] ss:$8 sps:$4 sm:$0xff]  }
  0x4c   :  { %v1632_v62 = vld [vmem:[#allocation5 + $0x190] ss:$8 sps:$4 sm:$0xff]   ;;  %v1636_v63 = vld [vmem:[#allocation5 + $0x184] ss:$8 sps:$4 sm:$0xff]   ;;  %v1635_v0 = vld [vmem:[#allocation5 + $0x80] ss:$8 sps:$4 sm:$0xff]  }
  0x4d   :  { %787 = vmatpush1.bf16.msra.mxu0 %v1575_v22  ;;  %v1638_v1 = vld [vmem:[#allocation2] ss:$28 sps:$4 sm:$0xff]   ;;  %v1644_v2 = vld [vmem:[#allocation5 + $0x274] ss:$8 sps:$4 sm:$0xff]   ;;  %v1641_v3 = vld [vmem:[#allocation5 + $0x180] ss:$8 sps:$4 sm:$0xff]  }
  0x4e   :  { %788 = vmatprep.subr.bf16.mxu0 %v1579_v23  ;;  %840 = vmatpush1.bf16.msra.mxu1 %v1578_v24  ;;  %v1642_v4 = vld [vmem:[#allocation5 + $0x270] ss:$8 sps:$4 sm:$0xff]   ;;  %v1684_v6 = vld [vmem:[#allocation2 + $0x3c] ss:$28 sps:$4 sm:$0xff]   ;;  %v1653_v12 = vld [vmem:[#allocation5 + $0x254] ss:$8 sps:$4 sm:$0xff]  }
  0x4f   :  { %841 = vmatprep.subr.bf16.mxu1 %v1582_v25  ;;  %v1645_v5 = vld [vmem:[#allocation2 + $0x8] ss:$28 sps:$4 sm:$0xff]   ;;  %v1650_v7 = vld [vmem:[#allocation5 + $0x264] ss:$8 sps:$4 sm:$0xff]   ;;  %v1686_v9 = vld [vmem:[#allocation5 + $0x300] ss:$8 sps:$4 sm:$0xff]  }
  0x50   :  { %v1688_v8 = vld [vmem:[#allocation5 + $0x304] ss:$8 sps:$4 sm:$0xff]   ;;  %v1690_v10 = vld [vmem:[#allocation2 + $0x44] ss:$28 sps:$4 sm:$0xff]   ;;  %v1648_v11 = vld [vmem:[#allocation5 + $0x260] ss:$8 sps:$4 sm:$0xff]  }
  0x51   :  { %789 = vmatpush1.bf16.msra.mxu0 %v1581_v26  ;;  %v1651_v13 = vld [vmem:[#allocation5 + $0x250] ss:$8 sps:$4 sm:$0xff]   ;;  %v1689_v14 = vld [vmem:[#allocation2 + $0x38] ss:$28 sps:$4 sm:$0xff]   ;;  %vm769_vm0 = vcmask 130048   ;;  %v1876_v21 = vmov 0  }
  0x52   :  { %790 = vmatprep.subr.bf16.mxu0 %v1585_v27  ;;  %842 = vmatpush1.bf16.msra.mxu1 %v1584_v28  ;;  %v1656_v15 = vld [vmem:[#allocation5 + $0x244] ss:$8 sps:$4 sm:$0xff]   ;;  %v1654_v18 = vld [vmem:[#allocation5 + $0x240] ss:$8 sps:$4 sm:$0xff]   ;;  %v1659_v19 = vld [vmem:[#allocation5 + $0x234] ss:$8 sps:$4 sm:$0xff]  }
  0x53   :  { %843 = vmatprep.subr.bf16.mxu1 %v1588_v29  ;;  %v1692_v16 = vld [vmem:[#allocation2 + $0x40] ss:$28 sps:$4 sm:$0xff]   ;;  %v1705_v17 = vld [vmem:[#allocation2 + $0x14] ss:$28 sps:$4 sm:$0xff]   ;;  %v1665_v25 = vld [vmem:[#allocation5 + $0x214] ss:$8 sps:$4 sm:$0xff]  }
  0x54   :  { %v1657_v20 = vld [vmem:[#allocation5 + $0x230] ss:$8 sps:$4 sm:$0xff]   ;;  %v1662_v22 = vld [vmem:[#allocation5 + $0x224] ss:$8 sps:$4 sm:$0xff]   ;;  %v1660_v24 = vld [vmem:[#allocation5 + $0x220] ss:$8 sps:$4 sm:$0xff]  }
  0x55   :  { %791 = vmatpush1.bf16.msra.mxu0 %v1587_v30  ;;  %v1702_v23 = vld [vmem:[#allocation2 + $0x18] ss:$28 sps:$4 sm:$0xff]   ;;  %v1663_v26 = vld [vmem:[#allocation5 + $0x210] ss:$8 sps:$4 sm:$0xff]   ;;  %v1706_v28 = vld [vmem:[#allocation2 + $0x50] ss:$28 sps:$4 sm:$0xff]  }
  0x56   :  { %792 = vmatprep.subr.bf16.mxu0 %v1591_v31  ;;  %844 = vmatpush1.bf16.msra.mxu1 %v1590_v32  ;;  %v1668_v27 = vld [vmem:[#allocation5 + $0x204] ss:$8 sps:$4 sm:$0xff]   ;;  %v1666_v29 = vld [vmem:[#allocation5 + $0x200] ss:$8 sps:$4 sm:$0xff]   ;;  %v1671_v30 = vld [vmem:[#allocation5 + $0x2f4] ss:$8 sps:$4 sm:$0xff]  }
  0x57   :  { %845 = vmatprep.subr.bf16.mxu1 %v1594_v33  ;;  %v1669_v31 = vld [vmem:[#allocation5 + $0x2f0] ss:$8 sps:$4 sm:$0xff]   ;;  %v1674_v32 = vld [vmem:[#allocation5 + $0x2e4] ss:$8 sps:$4 sm:$0xff]   ;;  %v1672_v33 = vld [vmem:[#allocation5 + $0x2e0] ss:$8 sps:$4 sm:$0xff]  }
  0x58   :  { %v1707_v47 = vld [vmem:[#allocation2 + $0x4c] ss:$28 sps:$4 sm:$0xff]   ;;  %v1712_v51 = vld [vmem:[#allocation7 + $0x70] sm:$0xff]   ;;  %s1877_s29 = smov [#allocation10]  }
  0x59   :  { %793 = vmatpush2.bf16.msra.mxu0 %v1593_v34  ;;  %v1677_v34 = vld [vmem:[#allocation5 + $0x2d4] ss:$8 sps:$4 sm:$0xff]   ;;  %s1319_s30 = sshll.u32 %s1877_s29, 4  ;;  %s1320_s30 = int_to_ptr.vmem [resolvable:$true] %s1319_s30 }
  0x5a   :  { %794 = vmatprep.subr.bf16.mxu0 %v1597_v35  ;;  %846 = vmatpush2.bf16.msra.mxu1 %v1596_v36  ;;  %v1675_v35 = vld [vmem:[#allocation5 + $0x2d0] ss:$8 sps:$4 sm:$0xff]   ;;  %v1680_v36 = vld [vmem:[#allocation5 + $0x2c4] ss:$8 sps:$4 sm:$0xff]   ;;  %s1838_s8 = scalar_lea.vmem %s1320_s30, 512  ;;  %p1843_p7 = scmp.lt.s32.totalorder %s1320_s30, %s1320_s30 }
  0x5b   :  { %847 = vmatprep.subr.bf16.mxu1 %v1600_v37  ;;  %v1678_v37 = vld [vmem:[#allocation5 + $0x2c0] ss:$8 sps:$4 sm:$0xff]   ;;  %p1839_p6 = scmp.ne.s32.totalorder %s1320_s30, %s1838_s8  ;;  %p1844_p8 = scmp.lt.s32.totalorder %s1838_s8, %s1838_s8 }
  0x5d   :  { %795 = vmatpush2.bf16.msra.mxu0 %v1599_v38  ;;  %v1683_v38 = vld [vmem:[#allocation5 + $0x2b4] ss:$8 sps:$4 sm:$0xff]   ;;  %p1845_p9 = por %p1844_p8, %p1843_p7 }
  0x5e   :  { %796 = vmatprep.subr.bf16.mxu0 %v1603_v39  ;;  %848 = vmatpush2.bf16.msra.mxu1 %v1602_v40  ;;  %v1681_v39 = vld [vmem:[#allocation5 + $0x2b0] ss:$8 sps:$4 sm:$0xff]   ;;  %v1695_v40 = vld [vmem:[#allocation5 + $0x2a4] ss:$8 sps:$4 sm:$0xff]  }
  0x5f   :  { %849 = vmatprep.subr.bf16.mxu1 %v1606_v41  ;;  %v1693_v41 = vld [vmem:[#allocation5 + $0x2a0] ss:$8 sps:$4 sm:$0xff]   ;;  %p1846_p10 = pnand %p1845_p9, %p1839_p6 }
  0x61   :  { %797 = vmatpush2.bf16.msra.mxu0 %v1605_v42  ;;  %v1698_v42 = vld [vmem:[#allocation5 + $0x294] ss:$8 sps:$4 sm:$0xff]  }
  0x62   :  { %798 = vmatprep.subr.bf16.mxu0 %v1609_v43  ;;  %850 = vmatpush2.bf16.msra.mxu1 %v1608_v44  ;;  %v1696_v43 = vld [vmem:[#allocation5 + $0x290] ss:$8 sps:$4 sm:$0xff]   ;;  %v1701_v44 = vld [vmem:[#allocation5 + $0x284] ss:$8 sps:$4 sm:$0xff]  }
  0x63   :  { %851 = vmatprep.subr.bf16.mxu1 %v1612_v45  ;;  %v1699_v45 = vld [vmem:[#allocation5 + $0x280] ss:$8 sps:$4 sm:$0xff]  }
  0x65   :  { %799 = vmatpush2.bf16.msra.mxu0 %v1611_v46  ;;  %v1703_v46 = vld [vmem:[#allocation2 + $0x10] ss:$28 sps:$4 sm:$0xff]  }
  0x66   :  { %800 = vmatprep.subr.bf16.mxu0 %v1615_v48  ;;  %852 = vmatpush2.bf16.msra.mxu1 %v1614_v49  ;;  %v1709_v48 = vld [vmem:[#allocation2 + $0x48] ss:$28 sps:$4 sm:$0xff]   ;;  %v1710_v49 = vld [vmem:[#allocation7 + $0x78] sm:$0xff]  }
  0x67   :  { %853 = vmatprep.subr.bf16.mxu1 %v1618_v50  ;;  %v1711_v50 = vld [vmem:[#allocation7 + $0x38] sm:$0xff]  }
  0x69   :  { %801 = vmatpush2.bf16.msra.mxu0 %v1617_v52  ;;  %v1713_v52 = vld [vmem:[#allocation7 + $0x30] sm:$0xff]  }
  0x6a   :  { %802 = vmatprep.subr.bf16.mxu0 %v1621_v53  ;;  %854 = vmatpush2.bf16.msra.mxu1 %v1620_v54  ;;  %v1714_v53 = vld [vmem:[#allocation7 + $0x68] sm:$0xff]  }
  0x6b   :  { %855 = vmatprep.subr.bf16.mxu1 %v1624_v55  ;;  %v1715_v54 = vld [vmem:[#allocation7 + $0x28] sm:$0xff]   ;;  %v1716_v55 = vld [vmem:[#allocation7 + $0x60] sm:$0xff]  }
  0x6d   :  { %803 = vmatpush2.bf16.msra.mxu0 %v1623_v56  ;;  %v1717_v56 = vld [vmem:[#allocation7 + $0x20] sm:$0xff]  }
  0x6e   :  { %804 = vmatprep.subr.bf16.mxu0 %v1627_v57  ;;  %856 = vmatpush2.bf16.msra.mxu1 %v1626_v58  ;;  %v1718_v57 = vld [vmem:[#allocation7 + $0x58] sm:$0xff]  }
  0x6f   :  { %857 = vmatprep.subr.bf16.mxu1 %v1630_v59  ;;  %v1719_v58 = vld [vmem:[#allocation7 + $0x18] sm:$0xff]   ;;  %v1720_v59 = vld [vmem:[#allocation7 + $0x50] sm:$0xff]  }
  0x71   :  { %805 = vmatpush2.bf16.msra.mxu0 %v1629_v60  ;;  %v1721_v60 = vld [vmem:[#allocation7 + $0x10] sm:$0xff]  }
  0x72   :  { %806 = vmatprep.subr.bf16.mxu0 %v1633_v61  ;;  %858 = vmatpush2.bf16.msra.mxu1 %v1632_v62  ;;  %v1722_v61 = vld [vmem:[#allocation7 + $0x48] sm:$0xff]  }
  0x73   :  { %859 = vmatprep.subr.bf16.mxu1 %v1636_v63  ;;  %v1723_v62 = vld [vmem:[#allocation7 + $0x8] sm:$0xff]   ;;  %v1724_v63 = vld [vmem:[#allocation7 + $0x40] sm:$0xff]  }
  0x75   :  { %807 = vmatpush2.bf16.msra.mxu0 %v1635_v0  ;;  %v1725_v0 = vld [vmem:[#allocation7] sm:$0xff]  }
  0x76   :  { %882 = vmatprep.subr.bf16.mxu0 %v1644_v2  ;;  %860 = vmatpush2.bf16.msra.mxu1 %v1641_v3 }
  0x77   :  { %949 = vmatprep.subr.bf16.mxu1 %v1688_v8 }
  0x78   :  { %809 = vmatmul.mubr.bf16.vlgmr.msra.gmra.mxu0 %v1638_v1 }
  0x79   :  { %883 = vmatpush1.bf16.msra.mxu0 %v1642_v4  ;;  %818 = vmatprep.mubr.bf16.mxu0 %v1684_v6 }
  0x7a   :  { %862 = vmatmul.mubr.bf16.vlgmr.msra.gmra.mxu1 %v1645_v5  ;;  %884 = vmatprep.subr.bf16.mxu0 %v1650_v7 }
  0x7b   :  { %950 = vmatpush1.bf16.msra.mxu1 %v1686_v9  ;;  %871 = vmatprep.mubr.bf16.mxu1 %v1690_v10 }
  0x7c   :  { %1473 = vmatprep.subr.bf16.mxu1 %v1710_v49 }
  0x7d   :  { %885 = vmatpush1.bf16.msra.mxu0 %v1648_v11  ;;  %v199_v11 = vlaneseq }
  0x7e   :  { %886 = vmatprep.subr.bf16.mxu0 %v1653_v12 }
  0x80   :  { %819 = vmatmul.mubr.bf16.gmra.mxu0 %v1689_v14  ;;  %v200_v14 = vshrl.u32 %v199_v11, 7 }
  0x81   :  { %887 = vmatpush1.bf16.msra.mxu0 %v1651_v13  ;;  %914 = vmatprep.mubr.bf16.mxu0 %v1705_v17 }
  0x82   :  { %888 = vmatprep.subr.bf16.mxu0 %v1656_v15  ;;  %872 = vmatmul.mubr.bf16.gmra.mxu1 %v1692_v16  ;;  %v205_v17 = vsub.s32 1, %v200_v14 }
  0x83   :  { %967 = vmatprep.mubr.bf16.mxu1 %v1876_v21 }
  0x85   :  { %889 = vmatpush1.bf16.msra.mxu0 %v1654_v18  ;;  %v197_v18 = vld [vmem:[%s1952_s2] sm:$0x3] }
  0x86   :  { %890 = vmatprep.subr.bf16.mxu0 %v1659_v19  ;;  %v201_v19 = vsub.s32 0, %v200_v14 }
  0x89   :  { %891 = vmatpush1.bf16.msra.mxu0 %v1657_v20 }
  0x8a   :  { %892 = vmatprep.subr.bf16.mxu0 %v1662_v22  ;;  %1445 = vmatmul.mubr.msk.bf16.vlgmr.msra.gmra.mxu1 %vm769_vm0, %v1702_v23  ;;  %v206_v22 = vrot.slane %v197_v18, %v205_v17  ;;  %v202_v23 = vrot.slane %v197_v18, %v201_v19 }
  0x8b   :  { %977 = vmatprep.mubr.bf16.mxu1 %v1876_v21  ;;  %1474 = vmatpush3.bf16.msra.mxu1 %v1711_v50 }
  0x8c   :  { %1475 = vmatprep.subr.bf16.mxu1 %v1712_v51 }
  0x8d   :  { %893 = vmatpush1.bf16.msra.mxu0 %v1660_v24 }
  0x8e   :  { %894 = vmatprep.subr.bf16.mxu0 %v1665_v25 }
  0x8f   :  { %1476 = vmatpush3.bf16.msra.mxu1 %v1713_v52 }
  0x90   :  { %1477 = vmatprep.subr.bf16.mxu1 %v1714_v53 }
  0x91   :  { %895 = vmatpush1.bf16.msra.mxu0 %v1663_v26 }
  0x92   :  { %896 = vmatprep.subr.bf16.mxu0 %v1668_v27  ;;  %1446 = vmatmul.mubr.msk.bf16.gmra.mxu1 %vm769_vm0, %v1706_v28 }
  0x93   :  { %1478 = vmatpush3.bf16.msra.mxu1 %v1715_v54 }
  0x94   :  { %1479 = vmatprep.subr.bf16.mxu1 %v1716_v55 }
  0x95   :  { %897 = vmatpush1.bf16.msra.mxu0 %v1666_v29 }
  0x96   :  { %898 = vmatprep.subr.bf16.mxu0 %v1671_v30 }
  0x97   :  { %1480 = vmatpush3.bf16.msra.mxu1 %v1717_v56 }
  0x98   :  { %1481 = vmatprep.subr.bf16.mxu1 %v1718_v57 }
  0x99   :  { %899 = vmatpush2.bf16.msra.mxu0 %v1669_v31 }
  0x9a   :  { %900 = vmatprep.subr.bf16.mxu0 %v1674_v32 }
  0x9b   :  { %1482 = vmatpush3.bf16.msra.mxu1 %v1719_v58 }
  0x9c   :  { %1483 = vmatprep.subr.bf16.mxu1 %v1720_v59 }
  0x9d   :  { %901 = vmatpush2.bf16.msra.mxu0 %v1672_v33 }
  0x9e   :  { %902 = vmatprep.subr.bf16.mxu0 %v1677_v34 }
  0x9f   :  { %1484 = vmatpush3.bf16.msra.mxu1 %v1721_v60 }
  0xa0   :  { %1485 = vmatprep.subr.bf16.mxu1 %v1722_v61 }
  0xa1   :  { %903 = vmatpush2.bf16.msra.mxu0 %v1675_v35 }
  0xa2   :  { %904 = vmatprep.subr.bf16.mxu0 %v1680_v36 }
  0xa3   :  { %1486 = vmatpush3.bf16.msra.mxu1 %v1723_v62 }
  0xa4   :  { %1487 = vmatprep.subr.bf16.mxu1 %v1724_v63 }
  0xa5   :  { %905 = vmatpush2.bf16.msra.mxu0 %v1678_v37 }
  0xa6   :  { %906 = vmatprep.subr.bf16.mxu0 %v1683_v38 }
  0xa7   :  { %1488 = vmatpush3.bf16.msra.mxu1 %v1725_v0 }
  0xa9   :  { %907 = vmatpush2.bf16.msra.mxu0 %v1681_v39 }
  0xaa   :  { %908 = vmatprep.subr.bf16.mxu0 %v1695_v40 }
  0xad   :  { %909 = vmatpush2.bf16.msra.mxu0 %v1693_v41 }
  0xae   :  { %910 = vmatprep.subr.bf16.mxu0 %v1698_v42 }
  0xb1   :  { %911 = vmatpush2.bf16.msra.mxu0 %v1696_v43 }
  0xb2   :  { %912 = vmatprep.subr.bf16.mxu0 %v1701_v44 }
  0xb5   :  { %913 = vmatpush2.bf16.msra.mxu0 %v1699_v45 }
  0xb8   :  { %915 = vmatmul.mubr.bf16.vlgmr.msra.gmra.mxu0 %v1703_v46 }
  0xb9   :  { %924 = vmatprep.mubr.bf16.mxu0 %v1707_v47 }
  0xc0   :  { %925 = vmatmul.mubr.bf16.gmra.mxu0 %v1709_v48 }
 0x138   :  { %v810_v5 = vpop.f32.mrf.mxu0 }
 0x139   :  { %v811_v27 = vadd.f32 %v810_v5, %v202_v23 }
 0x13a   :  { %v863_v1 = vpop.f32.mrf.mxu1  ;;  %v812_v7 = vpop.f32.mrf.mxu0 }
 0x13b   :  { %v813_v26 = vadd.f32 %v812_v7, %v206_v22  ;;  %v864_v34 = vadd.f32 %v863_v1, %v811_v27  ;;  %v1733_v27 = vld [vmem:[#allocation8] sm:$0xff]  }
 0x13c   :  { %v865_v2 = vpop.f32.mrf.mxu1  ;;  %v814_v9 = vpop.f32.mrf.mxu0 }
 0x13d   :  { %v815_v29 = vadd.f32 %v814_v9, %v202_v23  ;;  %v866_v32 = vadd.f32 %v865_v2, %v813_v26  ;;  %v1732_v26 = vld [vmem:[#allocation8 + $0x8] sm:$0xff]  }
 0x13e   :  { %v867_v3 = vpop.f32.mrf.mxu1  ;;  %v816_v12 = vpop.f32.mrf.mxu0 }
 0x13f   :  { %v817_v33 = vadd.f32 %v816_v12, %v206_v22  ;;  %v868_v36 = vadd.f32 %v867_v3, %v815_v29 }
 0x140   :  { %v869_v4 = vpop.f32.mrf.mxu1  ;;  %v820_v15 = vpop.f32.mrf.mxu0 }
 0x141   :  { %v870_v41 = vadd.f32 %v869_v4, %v817_v33  ;;  %v821_v45 = vadd.f32 %v820_v15, %v202_v23 }
 0x142   :  { %v873_v6 = vpop.f32.mrf.mxu1  ;;  %v822_v20 = vpop.f32.mrf.mxu0 }
 0x143   :  { %v823_v42 = vadd.f32 %v822_v20, %v206_v22  ;;  %v874_v56 = vadd.f32 %v873_v6, %v821_v45  ;;  %v1726_v20 = vld [vmem:[#allocation8 + $0x38] sm:$0xff]  }
 0x144   :  { %v875_v8 = vpop.f32.mrf.mxu1  ;;  %v824_v24 = vpop.f32.mrf.mxu0  ;;  %1511 = vmatprep.subr.bf16.mxu1 %v1726_v20 }
 0x145   :  { %v825_v47 = vadd.f32 %v824_v24, %v202_v23  ;;  %v876_v53 = vadd.f32 %v875_v8, %v823_v42  ;;  %v1729_v23 = vld [vmem:[#allocation8 + $0x20] sm:$0xff]   ;;  %v1730_v24 = vld [vmem:[#allocation8 + $0x18] sm:$0xff]  }
 0x146   :  { %v877_v10 = vpop.f32.mrf.mxu1  ;;  %v826_v28 = vpop.f32.mrf.mxu0 }
 0x147   :  { %v827_v54 = vadd.f32 %v826_v28, %v206_v22  ;;  %v878_v58 = vadd.f32 %v877_v10, %v825_v47  ;;  %v1728_v22 = vld [vmem:[#allocation8 + $0x28] sm:$0xff]  }
 0x148   :  { %v879_v13 = vpop.f32.mrf.mxu1 }
 0x149   :  { %v880_v63 = vadd.f32 %v879_v13, %v827_v54 }
 0x14a   :  { %v969_v16 = vpop.f32.mrf.mxu1 }
 0x14c   :  { %v971_v21 = vpop.f32.mrf.mxu1 }
 0x14e   :  { %v973_v25 = vpop.f32.mrf.mxu1 }
 0x150   :  { %v975_v31 = vpop.f32.mrf.mxu1 }
 0x152   :  { %v979_v40 = vpop.f32.mrf.mxu1 }
 0x154   :  { %v981_v51 = vpop.f32.mrf.mxu1 }
 0x156   :  { %v983_v61 = vpop.f32.mrf.mxu1 }
 0x158   :  { %v985_v7 = vpop.f32.mrf.mxu1 }
 0x178   :  { %v916_v30 = vpop.f32.mrf.mxu0 }
 0x179   :  { %v917_v38 = vadd.f32 %v916_v30, %v864_v34  ;;  %v1447_v30 = vld [vmem:[%s1954_s4] ss:$0 sm:$0xff] }
 0x17a   :  { %v918_v35 = vpop.f32.mrf.mxu0 }
 0x17b   :  { %v919_v37 = vadd.f32 %v918_v35, %v866_v32  ;;  %v970_v50 = vadd.f32 %v969_v16, %v917_v38 }
 0x17c   :  { %v920_v39 = vpop.f32.mrf.mxu0 }
 0x17d   :  { %v972_v43 = vadd.f32 %v971_v21, %v919_v37  ;;  %v921_v44 = vadd.f32 %v920_v39, %v868_v36  ;;  %v1727_v21 = vld [vmem:[#allocation8 + $0x30] sm:$0xff]  }
 0x17e   :  { %v922_v46 = vpop.f32.mrf.mxu0 }
 0x17f   :  { %v974_v48 = vadd.f32 %v973_v25, %v921_v44  ;;  %v923_v49 = vadd.f32 %v922_v46, %v870_v41  ;;  %1734 = vtanh.f32 %v972_v43  ;;  %v1731_v25 = vld [vmem:[#allocation8 + $0x10] sm:$0xff]  }
 0x180   :  { %v926_v52 = vpop.f32.mrf.mxu0 }
 0x181   :  { %v976_v55 = vadd.f32 %v975_v31, %v923_v49  ;;  %1736 = vtanh.f32 %v974_v48  ;;  %v927_v60 = vadd.f32 %v926_v52, %v874_v56 }
 0x182   :  { %v928_v57 = vpop.f32.mrf.mxu0 }
 0x183   :  { %1738 = vtanh.f32 %v976_v55  ;;  %v929_v59 = vadd.f32 %v928_v57, %v876_v53  ;;  %v980_v5 = vadd.f32 %v979_v40, %v927_v60 }
 0x184   :  { %1740 = vtanh.f32 %v970_v50  ;;  %v930_v62 = vpop.f32.mrf.mxu0 }
 0x185   :  { %v982_v0 = vadd.f32 %v981_v51, %v929_v59  ;;  %v931_v1 = vadd.f32 %v930_v62, %v878_v58  ;;  %v1464_v51 = vld [vmem:[%s1956_s6] ss:$0 sm:$0xff] }
 0x186   :  { %v932_v2 = vpop.f32.mrf.mxu0 }
 0x187   :  { %v984_v3 = vadd.f32 %v983_v61, %v931_v1  ;;  %v933_v4 = vadd.f32 %v932_v2, %v880_v63  ;;  %1742 = vtanh.f32 %v982_v0 }
 0x189   :  { %v986_v8 = vadd.f32 %v985_v7, %v933_v4  ;;  %1744 = vtanh.f32 %v984_v3 }
 0x18b   :  { %1746 = vtanh.f32 %v986_v8 }
 0x18c   :  { %1748 = vtanh.f32 %v980_v5  ;;  %v1735_v6 = vpop.eup %1734 }
 0x18e   :  { %v1737_v9 = vpop.eup %1736 }
 0x190   :  { %v1739_v10 = vpop.eup %1738 }
 0x191   :  { %v1741_v11 = vpop.eup %1740  ;;  %v997_v12 = vpack.c.bf16 %v1739_v10, %v1735_v6 }
 0x192   :  { %v996_v14 = vpack.c.bf16 %v1737_v9, %v1741_v11 }
 0x193   :  { %1167 = vmatprep.mubr.bf16.mxu1 %v997_v12 }
 0x194   :  { %1168 = vmatmul.mubr.bf16.vlgmr.msra.gmra.mxu1 %v996_v14  ;;  %v1743_v13 = vpop.eup %1742 }
 0x195   :  { %1512 = vmatpush3.bf16.msra.mxu1 %v1726_v20 }
 0x196   :  { %v1745_v15 = vpop.eup %1744  ;;  %1513 = vmatprep.subr.bf16.mxu1 %v1727_v21 }
 0x198   :  { %v1747_v16 = vpop.eup %1746 }
 0x199   :  { %v1749_v17 = vpop.eup %1748  ;;  %v999_v18 = vpack.c.bf16 %v1747_v16, %v1743_v13  ;;  %1514 = vmatpush3.bf16.msra.mxu1 %v1727_v21 }
 0x19a   :  { %v998_v19 = vpack.c.bf16 %v1745_v15, %v1749_v17  ;;  %1515 = vmatprep.subr.bf16.mxu1 %v1728_v22 }
 0x19b   :  { %1175 = vmatprep.mubr.bf16.mxu1 %v999_v18 }
 0x19c   :  { %1176 = vmatmul.mubr.bf16.gmra.mxu1 %v998_v19 }
 0x19d   :  { %1516 = vmatpush3.bf16.msra.mxu1 %v1728_v22 }
 0x19e   :  { %1517 = vmatprep.subr.bf16.mxu1 %v1729_v23 }
 0x1a1   :  { %1518 = vmatpush3.bf16.msra.mxu1 %v1729_v23 }
 0x1a2   :  { %1519 = vmatprep.subr.bf16.mxu1 %v1730_v24 }
 0x1a5   :  { %1520 = vmatpush3.bf16.msra.mxu1 %v1730_v24 }
 0x1a6   :  { %1521 = vmatprep.subr.bf16.mxu1 %v1731_v25 }
 0x1a9   :  { %1522 = vmatpush3.bf16.msra.mxu1 %v1731_v25 }
 0x1aa   :  { %1523 = vmatprep.subr.bf16.mxu1 %v1732_v26 }
 0x1ad   :  { %1524 = vmatpush3.bf16.msra.mxu1 %v1732_v26 }
 0x1ae   :  { %1525 = vmatprep.subr.bf16.mxu1 %v1733_v27 }
 0x1b1   :  { %1526 = vmatpush3.bf16.msra.mxu1 %v1733_v27 }
 0x254   :  { %v1489_v28 = vpop.f32.mrf.mxu1 }
 0x256   :  { %v1490_v29 = vpop.f32.mrf.mxu1 }
 0x257   :  { %v1491_v31 = vadd.f32 %v1490_v29, %v1489_v28 }
 0x258   :  { %v1492_v32 = vpop.f32.mrf.mxu1 }
 0x259   :  { %v1170_v33 = vadd.f32 %v1491_v31, %v1447_v30 }
 0x25a   :  { %v1493_v34 = vpop.f32.mrf.mxu1 }
 0x25b   :  { %v1494_v35 = vadd.f32 %v1493_v34, %v1492_v32  ;;  %1750 = vtanh.f32 %v1170_v33 }
 0x25c   :  { %v1495_v36 = vpop.f32.mrf.mxu1 }
 0x25d   :  { %v1173_v37 = vadd.f32 %v1494_v35, %v1447_v30 }
 0x25e   :  { %v1496_v38 = vpop.f32.mrf.mxu1 }
 0x25f   :  { %1752 = vtanh.f32 %v1173_v37  ;;  %v1497_v39 = vadd.f32 %v1496_v38, %v1495_v36 }
 0x260   :  { %v1498_v40 = vpop.f32.mrf.mxu1 }
 0x261   :  { %v1178_v41 = vadd.f32 %v1497_v39, %v1447_v30 }
 0x262   :  { %v1499_v42 = vpop.f32.mrf.mxu1 }
 0x263   :  { %v1500_v43 = vadd.f32 %v1499_v42, %v1498_v40  ;;  %1754 = vtanh.f32 %v1178_v41 }
 0x265   :  { %v1181_v44 = vadd.f32 %v1500_v43, %v1447_v30 }
 0x267   :  { %1756 = vtanh.f32 %v1181_v44 }
 0x268   :  { %v1751_v45 = vpop.eup %1750 }
 0x26c   :  { %v1753_v46 = vpop.eup %1752 }
 0x26d   :  { %v1188_v47 = vpack.c.bf16 %v1753_v46, %v1751_v45 }
 0x26f   :  { %1527 = vmatprep.mubr.bf16.mxu1 %v1188_v47 }
 0x270   :  { %v1755_v48 = vpop.eup %1754 }
 0x274   :  { %v1757_v49 = vpop.eup %1756 }
 0x275   :  { %v1189_v50 = vpack.c.bf16 %v1757_v49, %v1755_v48 }
 0x277   :  { %1528 = vmatmul.mubr.bf16.vlgmr.msra.gmra.mxu1 %v1189_v50 }
 0x337   :  { %v1529_v52 = vpop.f32.mrf.mxu1 }
 0x338   :  { %v1304_v53 = vadd.f32 %v1529_v52, %v1464_v51 }
 0x339   :  { %v1295_v54 = vpop.f32.mrf.mxu1 }
 0x33a   :  { %1312 = vst [vmem:[#allocation10 + $0x10] sm:$0xff] %v1304_v53  ;;  %v1296_v55 = vadd.f32 %v1464_v51, %v1295_v54 }
 0x33b   :  { %v1530_v56 = vpop.f32.mrf.mxu1 }
 0x33c   :  { %1310 = vst [vmem:[#allocation10] sm:$0xff] %v1296_v55  ;;  %v1307_v57 = vadd.f32 %v1530_v56, %v1464_v51 }
 0x33d   :  { %v1298_v58 = vpop.f32.mrf.mxu1 }
 0x33e   :  { %1313 = vst [vmem:[#allocation10 + $0x18] sm:$0xff] %v1307_v57  ;;  %v1299_v59 = vadd.f32 %v1464_v51, %v1298_v58 }
 0x340   :  { %1311 = vst [vmem:[#allocation10 + $0x8] sm:$0xff] %v1299_v59 }
 0x341   :  { %1849 = shalt.err (!%p1846_p10)
}
 0x342   :  { %1325 = dma.vmem_to_hbm [thread:$0]  %s1320_s30, 512, %s1957_s7, [#allocation4], %s1867_s27, %s1867_s27, %s1868_s28  }
 0x343   :  { %1864 = dma.done.wait [#allocation4], 512  }
 0x344   :  { %1865 = vsyncadd [#allocation4], 4294966784 }
 0x345   :  { %1329 = vsyncpa [#allocation3], 1 }
 0x346   :  { %1330 = vsyncpa [#allocation6], 1 }
 0x347   :  { %1331 = vsyncpa [#allocation9], 1 }
 0x348   :  { %1332 = vsyncpa [#allocation4], 1 }

</bundles_post_ra>
